<compile_context>
chip_gen: v7x
topology: tpu7x:2x2x1
jax: 0.10.0
libtpu: 0.0.40
codegen_flags: <defaults>
</compile_context>

<pallas_src>
import jax
import jax.numpy as jnp
from jax.experimental import pallas as pl
from jax.experimental.pallas import tpu as pltpu

IN_FEATURES = 83
OUT_FEATURES = 8
HID1 = 512
HID2 = 256

OUT_PAD = 128   # 8 -> 128 (lane-dense output, unmasked stores)


def _round_up(n, m):
    return ((n + m - 1) // m) * m


def _choose_tile(batch):
    """Pick batch tile TB and padded batch b_pad (b_pad % TB == 0, TB % 8 == 0)."""
    b8 = _round_up(max(batch, 1), 8)
    if b8 <= 16:
        # Tiny batch: single tile equal to the (padded) full batch.
        return b8, b8
    if b8 <= 2048:
        # Medium batch: two tiles (multiple of 16 for bf16 output packing) so the
        # parallel batch axis can use both v7x TensorCores; waste <= 31 rows.
        half = _round_up(b8 // 2, 16)
        return half, 2 * half
    # Large batch: 256-row multiples (MXU-friendly on all gens), capped at 1024,
    # preferring the candidate with the least padded waste (ties -> larger TB).
    best_tb, best_pad = 256, _round_up(b8, 256)
    for tb in (512, 1024):
        pad = _round_up(b8, tb)
        if pad <= best_pad:
            best_tb, best_pad = tb, pad
    return best_tb, best_pad


def mlp_policy_kernel(x_ref, w1_ref, b1_ref, w2_ref, b2_ref, w3_ref, b3_ref, o_ref):
    # x_ref: (TB, 83) f32; weights bf16 (in, out); biases f32; o_ref: (TB, 128) bf16.
    x = x_ref[...].astype(jnp.bfloat16)                       # cast on-chip, no wrapper pass
    # lin1 + relu (ragged K=83 handled by the MXU; f32 accumulate, f32 epilogue)
    h1 = jnp.dot(x, w1_ref[...], preferred_element_type=jnp.float32) + b1_ref[...]
    h1 = jnp.maximum(h1, 0.0).astype(jnp.bfloat16)
    # lin2 + relu
    h2 = jnp.dot(h1, w2_ref[...], preferred_element_type=jnp.float32) + b2_ref[...]
    h2 = jnp.maximum(h2, 0.0).astype(jnp.bfloat16)
    # lin3 (no activation), lane-dense 128-wide bf16 output (halves writeback)
    o = jnp.dot(h2, w3_ref[...], preferred_element_type=jnp.float32) + b3_ref[...]
    o_ref[...] = o.astype(o_ref.dtype)


def mlp_policy(x, params):
    """x: (batch, 83) f32. Returns (batch, 8) f32."""
    w1, b1, w2, b2, w3, b3 = params
    batch = x.shape[0]

    TB, b_pad = _choose_tile(batch)
    if b_pad != batch:
        # Row-only zero pad for ragged batches (no column pad, no dtype cast here).
        x = jnp.pad(x, ((0, b_pad - batch), (0, 0)))

    grid = (b_pad // TB,)
    out = pl.pallas_call(
        mlp_policy_kernel,
        out_shape=jax.ShapeDtypeStruct((b_pad, OUT_PAD), jnp.bfloat16),
        grid=grid,
        in_specs=[
            pl.BlockSpec((TB, IN_FEATURES), lambda i: (i, 0)),   # x tile, pipelined over batch
            pl.BlockSpec((IN_FEATURES, HID1), lambda i: (0, 0)),  # weights/biases: constant
            pl.BlockSpec((1, HID1), lambda i: (0, 0)),            #   index_map -> DMA'd once,
            pl.BlockSpec((HID1, HID2), lambda i: (0, 0)),         #   VMEM-resident
            pl.BlockSpec((1, HID2), lambda i: (0, 0)),
            pl.BlockSpec((HID2, OUT_PAD), lambda i: (0, 0)),
            pl.BlockSpec((1, OUT_PAD), lambda i: (0, 0)),
        ],
        out_specs=pl.BlockSpec((TB, OUT_PAD), lambda i: (i, 0)),
        compiler_params=pltpu.CompilerParams(dimension_semantics=("parallel",)),
    )(x, w1, b1, w2, b2, w3, b3)

    # TODO(synk): for fused consumers, return the padded (b_pad, 128) bf16 buffer directly
    # and slice lazily downstream; here we return the module's (batch, 8) f32 contract.
    return out[:batch, :OUT_FEATURES].astype(jnp.float32)


def init_params(key):
    """nn.Linear-style init U(-1/sqrt(fan_in), 1/sqrt(fan_in)); weights bf16, biases f32."""
    def linear(key, fan_in, fan_out):
        kw, kb = jax.random.split(key)
        bound = 1.0 / jnp.sqrt(float(fan_in))
        w = jax.random.uniform(kw, (fan_in, fan_out), jnp.float32, -bound, bound)  # (in, out)
        b = jax.random.uniform(kb, (1, fan_out), jnp.float32, -bound, bound)
        return w, b

    k1, k2, k3 = jax.random.split(key, 3)
    w1, b1 = linear(k1, IN_FEATURES, HID1)
    w2, b2 = linear(k2, HID1, HID2)
    w3, b3 = linear(k3, HID2, OUT_FEATURES)

    # Only the 8-wide output dim is zero-padded (to 128 lanes); mathematically inert.
    w3p = jnp.zeros((HID2, OUT_PAD), jnp.float32).at[:, :OUT_FEATURES].set(w3)
    b3p = jnp.zeros((1, OUT_PAD), jnp.float32).at[:, :OUT_FEATURES].set(b3)
    return (w1.astype(jnp.bfloat16), b1,
            w2.astype(jnp.bfloat16), b2,
            w3p.astype(jnp.bfloat16), b3p)


def mlp_policy_ref(x, params):
    """Pure-JAX reference mirroring the kernel's bf16-operand / f32-accumulate path."""
    w1, b1, w2, b2, w3, b3 = params
    f32 = jnp.float32
    xb = x.astype(jnp.bfloat16).astype(f32)
    h1 = jnp.maximum(xb @ w1.astype(f32) + b1, 0.0)
    h1 = h1.astype(jnp.bfloat16).astype(f32)
    h2 = jnp.maximum(h1 @ w2.astype(f32) + b2, 0.0)
    h2 = h2.astype(jnp.bfloat16).astype(f32)
    out = h2 @ w3.astype(f32) + b3
    return out[:, :OUT_FEATURES].astype(jnp.bfloat16).astype(f32)


if __name__ == "__main__":
    key = jax.random.PRNGKey(0)
    k_x, k_p = jax.random.split(key)

    # Batched version of: x = torch.rand((1, in_features)) - 0.5  -> uniform in [-0.5, 0.5)
    batch = 16
    x = jax.random.uniform(k_x, (batch, IN_FEATURES), jnp.float32) - 0.5
    params = init_params(k_p)

    out = mlp_policy(x, params)
    out = jax.block_until_ready(out)

    ref = mlp_policy_ref(x, params)
    assert out.shape == (batch, OUT_FEATURES)
    # bf16 operands + bf16 output store -> relaxed tolerance vs the mirrored reference.
    assert jnp.allclose(out, ref, atol=2e-2, rtol=2e-2), "mismatch vs reference"

    print("KERNEL_OK")
</pallas_src>

<mosaic_0001>
module attributes {stable_mosaic.version = 11 : i64} {
  func.func @mlp_policy_kernel(%arg0: i32, %arg1: memref<16x83xf32, #tpu.memory_space<vmem>>, %arg2: memref<83x512xbf16, #tpu.memory_space<vmem>>, %arg3: memref<1x512xf32, #tpu.memory_space<vmem>>, %arg4: memref<512x256xbf16, #tpu.memory_space<vmem>>, %arg5: memref<1x256xf32, #tpu.memory_space<vmem>>, %arg6: memref<256x128xbf16, #tpu.memory_space<vmem>>, %arg7: memref<1x128xf32, #tpu.memory_space<vmem>>, %arg8: memref<16x128xbf16, #tpu.memory_space<vmem>>) attributes {dimension_semantics = [#tpu.dimension_semantics<parallel>], iteration_bounds = array<i64: 1>, scalar_prefetch = 0 : i64, scratch_operands = 0 : i64, tpu.core_type = #tpu.core_type<tc>, window_params = [{transform_indices = @transform_0, window_bounds = array<i64: 16, 83>}, {pipeline_mode = #tpu.pipeline_mode<synchronous>, transform_indices = @transform_1, window_bounds = array<i64: 83, 512>}, {pipeline_mode = #tpu.pipeline_mode<synchronous>, transform_indices = @transform_2, window_bounds = array<i64: 1, 512>}, {pipeline_mode = #tpu.pipeline_mode<synchronous>, transform_indices = @transform_3, window_bounds = array<i64: 512, 256>}, {pipeline_mode = #tpu.pipeline_mode<synchronous>, transform_indices = @transform_4, window_bounds = array<i64: 1, 256>}, {pipeline_mode = #tpu.pipeline_mode<synchronous>, transform_indices = @transform_5, window_bounds = array<i64: 256, 128>}, {pipeline_mode = #tpu.pipeline_mode<synchronous>, transform_indices = @transform_6, window_bounds = array<i64: 1, 128>}, {transform_indices = @transform_7, window_bounds = array<i64: 16, 128>}]} {
    %c0 = arith.constant 0 : index
    %c0_0 = arith.constant 0 : index
    %0 = vector.load %arg1[%c0, %c0_0] : memref<16x83xf32, #tpu.memory_space<vmem>>, vector<16x83xf32>
    %1 = arith.truncf %0 : vector<16x83xf32> to vector<16x83xbf16>
    %c0_1 = arith.constant 0 : index
    %c0_2 = arith.constant 0 : index
    %2 = vector.load %arg2[%c0_1, %c0_2] : memref<83x512xbf16, #tpu.memory_space<vmem>>, vector<83x512xbf16>
    %cst = arith.constant dense<0.000000e+00> : vector<16x512xf32>
    %3 = tpu.matmul %1, %2, %cst {dimension_numbers = #tpu.dot_dimension_numbers<[1], [0], [0], [1], [0, 0, 1, 1], [], []>} : vector<16x83xbf16>, vector<83x512xbf16>, vector<16x512xf32> -> vector<16x512xf32>
    %c0_3 = arith.constant 0 : index
    %c0_4 = arith.constant 0 : index
    %4 = vector.load %arg3[%c0_3, %c0_4] : memref<1x512xf32, #tpu.memory_space<vmem>>, vector<1x512xf32>
    %5 = vector.broadcast %4 : vector<1x512xf32> to vector<16x512xf32>
    %6 = arith.addf %3, %5 : vector<16x512xf32>
    %cst_5 = arith.constant 0.000000e+00 : f32
    %7 = vector.broadcast %cst_5 : f32 to vector<16x512xf32>
    %8 = arith.maximumf %6, %7 : vector<16x512xf32>
    %9 = arith.truncf %8 : vector<16x512xf32> to vector<16x512xbf16>
    %c0_6 = arith.constant 0 : index
    %c0_7 = arith.constant 0 : index
    %10 = vector.load %arg4[%c0_6, %c0_7] : memref<512x256xbf16, #tpu.memory_space<vmem>>, vector<512x256xbf16>
    %cst_8 = arith.constant dense<0.000000e+00> : vector<16x256xf32>
    %11 = tpu.matmul %9, %10, %cst_8 {dimension_numbers = #tpu.dot_dimension_numbers<[1], [0], [0], [1], [0, 0, 1, 1], [], []>} : vector<16x512xbf16>, vector<512x256xbf16>, vector<16x256xf32> -> vector<16x256xf32>
    %c0_9 = arith.constant 0 : index
    %c0_10 = arith.constant 0 : index
    %12 = vector.load %arg5[%c0_9, %c0_10] : memref<1x256xf32, #tpu.memory_space<vmem>>, vector<1x256xf32>
    %13 = vector.broadcast %12 : vector<1x256xf32> to vector<16x256xf32>
    %14 = arith.addf %11, %13 : vector<16x256xf32>
    %cst_11 = arith.constant 0.000000e+00 : f32
    %15 = vector.broadcast %cst_11 : f32 to vector<16x256xf32>
    %16 = arith.maximumf %14, %15 : vector<16x256xf32>
    %17 = arith.truncf %16 : vector<16x256xf32> to vector<16x256xbf16>
    %c0_12 = arith.constant 0 : index
    %c0_13 = arith.constant 0 : index
    %18 = vector.load %arg6[%c0_12, %c0_13] : memref<256x128xbf16, #tpu.memory_space<vmem>>, vector<256x128xbf16>
    %cst_14 = arith.constant dense<0.000000e+00> : vector<16x128xf32>
    %19 = tpu.matmul %17, %18, %cst_14 {dimension_numbers = #tpu.dot_dimension_numbers<[1], [0], [0], [1], [0, 0, 1, 1], [], []>} : vector<16x256xbf16>, vector<256x128xbf16>, vector<16x128xf32> -> vector<16x128xf32>
    %c0_15 = arith.constant 0 : index
    %c0_16 = arith.constant 0 : index
    %20 = vector.load %arg7[%c0_15, %c0_16] : memref<1x128xf32, #tpu.memory_space<vmem>>, vector<1x128xf32>
    %21 = vector.broadcast %20 : vector<1x128xf32> to vector<16x128xf32>
    %22 = arith.addf %19, %21 : vector<16x128xf32>
    %23 = arith.truncf %22 : vector<16x128xf32> to vector<16x128xbf16>
    %c0_17 = arith.constant 0 : index
    %c0_18 = arith.constant 0 : index
    %24 = vector.load %arg8[%c0_17, %c0_18] : memref<16x128xbf16, #tpu.memory_space<vmem>>, vector<16x128xbf16>
    tpu.vector_store %arg8[%c0_17, %c0_18], %23 {strides = array<i32>} : memref<16x128xbf16, #tpu.memory_space<vmem>>, vector<16x128xbf16>,
    return
  }
  func.func @transform_0(%arg0: i32) -> (i32, i32) {
    %c0_i32 = arith.constant 0 : i32
    %c0_i32_0 = arith.constant 0 : i32
    return %arg0, %c0_i32 : i32, i32
  }
  func.func @transform_1(%arg0: i32) -> (i32, i32) {
    %c0_i32 = arith.constant 0 : i32
    %c0_i32_0 = arith.constant 0 : i32
    %c0_i32_1 = arith.constant 0 : i32
    return %c0_i32, %c0_i32_0 : i32, i32
  }
  func.func @transform_2(%arg0: i32) -> (i32, i32) {
    %c0_i32 = arith.constant 0 : i32
    %c0_i32_0 = arith.constant 0 : i32
    %c0_i32_1 = arith.constant 0 : i32
    return %c0_i32, %c0_i32_0 : i32, i32
  }
  func.func @transform_3(%arg0: i32) -> (i32, i32) {
    %c0_i32 = arith.constant 0 : i32
    %c0_i32_0 = arith.constant 0 : i32
    %c0_i32_1 = arith.constant 0 : i32
    return %c0_i32, %c0_i32_0 : i32, i32
  }
  func.func @transform_4(%arg0: i32) -> (i32, i32) {
    %c0_i32 = arith.constant 0 : i32
    %c0_i32_0 = arith.constant 0 : i32
    %c0_i32_1 = arith.constant 0 : i32
    return %c0_i32, %c0_i32_0 : i32, i32
  }
  func.func @transform_5(%arg0: i32) -> (i32, i32) {
    %c0_i32 = arith.constant 0 : i32
    %c0_i32_0 = arith.constant 0 : i32
    %c0_i32_1 = arith.constant 0 : i32
    return %c0_i32, %c0_i32_0 : i32, i32
  }
  func.func @transform_6(%arg0: i32) -> (i32, i32) {
    %c0_i32 = arith.constant 0 : i32
    %c0_i32_0 = arith.constant 0 : i32
    %c0_i32_1 = arith.constant 0 : i32
    return %c0_i32, %c0_i32_0 : i32, i32
  }
  func.func @transform_7(%arg0: i32) -> (i32, i32) {
    %c0_i32 = arith.constant 0 : i32
    %c0_i32_0 = arith.constant 0 : i32
    return %arg0, %c0_i32 : i32, i32
  }
}

</mosaic_0001>

<bundles_post_ra>
// kernel: tpu_custom_call.1
= control target key start
LH: loop header
LB: loop body
LE: loop exit
PB: predicated region body
PF: predicated region fallthrough
CT: control target
= control target key end

     0   :  { %12 = vsyncpa [#allocation3], 0  ;;  %s1635_s0 = inlined_call_operand.hbm [shape: f32[16,83], index: 0, kind: input, shape index: {}]   ;;  %s1636_s1 = inlined_call_operand.hbm [shape: bf16[83,512], index: 1, kind: input, shape index: {}]   ;;  %s1637_s2 = inlined_call_operand.vmem [shape: f32[1,512], index: 2, kind: input, shape index: {}]   ;;  %s1638_s3 = inlined_call_operand.hbm [shape: bf16[512,256], index: 3, kind: input, shape index: {}]   ;;  %s1639_s4 = inlined_call_operand.vmem [shape: f32[1,256], index: 4, kind: input, shape index: {}]   ;;  %s1640_s5 = inlined_call_operand.hbm [shape: bf16[256,128], index: 5, kind: input, shape index: {}]   ;;  %s1641_s6 = inlined_call_operand.vmem [shape: f32[1,128], index: 6, kind: input, shape index: {}]   ;;  %s1642_s7 = inlined_call_operand.hbm [shape: bf16[16,128], index: 7, kind: output, shape index: {}]  }
   0x1   :  { %13 = vsyncpa [#allocation6], 0 }
   0x2   :  { %14 = vsyncpa [#allocation9], 0 }
   0x3   :  { %15 = vsyncpa [#allocation4], 0  ;;  %s1474_s24 = smov [#allocation5]   ;;  %s1356_s28 = scalar_lea.hbm %s1636_s1, 2816 }
   0x4   :  { %s33_s25 = sshll.u32 %s1474_s24, 4  ;;  %p1357_p0 = scmp.ne.s32.totalorder %s1636_s1, %s1356_s28  ;;  %s34_s25 = int_to_ptr.vmem [resolvable:$true] %s33_s25 }
   0x5   :  { %p1360_p1 = scmp.lt.u32.totalorder %s1356_s28, %s1636_s1 }
   0x7   :  { %p1362_p2 = pnand %p1360_p1, %p1357_p0 }
   0x9   :  { %1365 = shalt.err (!%p1362_p2)
}
   0xa   :  { %s1366_s10 = scalar_lea.vmem %s34_s25, 2816  ;;  %p1371_p4 = scmp.lt.s32.totalorder %s34_s25, %s34_s25 }
   0xb   :  { %p1367_p3 = scmp.ne.s32.totalorder %s34_s25, %s1366_s10  ;;  %p1372_p5 = scmp.lt.s32.totalorder %s1366_s10, %s1366_s10 }
   0xd   :  { %p1373_p6 = por %p1372_p5, %p1371_p4 }
   0xf   :  { %p1374_p7 = pnand %p1373_p6, %p1367_p3 }
  0x11   :  { %1377 = shalt.err (!%p1374_p7)
}
  0x12   :  { %s1475_s11 = smov 256   ;;  %s1476_s12 = smov 16  }
  0x13   :  { %39 = dma.hbm_to_vmem [thread:$0]  %s1636_s1, 2816, %s34_s25, [#allocation6], %s1475_s11, %s1475_s11, %s1476_s12  }
  0x14   :  { %s1477_s15 = smov [#allocation2]   ;;  %s1378_s19 = scalar_lea.hbm %s1635_s0, 256 }
  0x15   :  { %s21_s16 = sshll.u32 %s1477_s15, 4  ;;  %p1379_p8 = scmp.ne.s32.totalorder %s1635_s0, %s1378_s19  ;;  %s22_s16 = int_to_ptr.vmem [resolvable:$true] %s21_s16 }
  0x16   :  { %p1382_p9 = scmp.lt.u32.totalorder %s1378_s19, %s1635_s0 }
  0x18   :  { %p1384_p10 = pnand %p1382_p9, %p1379_p8 }
  0x1a   :  { %1387 = shalt.err (!%p1384_p10)
}
  0x1b   :  { %s1388_s24 = scalar_lea.vmem %s22_s16, 256  ;;  %p1393_p12 = scmp.lt.s32.totalorder %s22_s16, %s22_s16 }
  0x1c   :  { %p1389_p11 = scmp.ne.s32.totalorder %s22_s16, %s1388_s24  ;;  %p1394_p13 = scmp.lt.s32.totalorder %s1388_s24, %s1388_s24 }
  0x1e   :  { %p1395_p0 = por %p1394_p13, %p1393_p12 }
  0x20   :  { %p1396_p1 = pnand %p1395_p0, %p1389_p11 }
  0x22   :  { %1399 = shalt.err (!%p1396_p1)
}
  0x23   :  { %s1478_s1 = smov 128   ;;  %s1479_s25 = smov 8  }
  0x24   :  { %27 = dma.hbm_to_vmem [thread:$0]  %s1635_s0, 256, %s22_s16, [#allocation3], %s1478_s1, %s1478_s1, %s1479_s25  }
  0x25   :  { %s1480_s28 = smov [#allocation7]   ;;  %s1481_s30 = smov [#allocation8]  }
  0x26   :  { %s47_s29 = sshll.u32 %s1480_s28, 4  ;;  %s61_s8 = sshll.u32 %s1481_s30, 4  ;;  %s48_s29 = int_to_ptr.vmem [resolvable:$true] %s47_s29  ;;  %s1551_s8 = int_to_ptr.vmem [resolvable:$true] %s61_s8 }
  0x27   :  { %s1400_s11 = scalar_lea.hbm %s1638_s3, 8192 }
  0x28   :  { %p1401_p2 = scmp.ne.s32.totalorder %s1638_s3, %s1400_s11  ;;  %p1404_p3 = scmp.lt.u32.totalorder %s1400_s11, %s1638_s3 }
  0x2a   :  { %p1406_p4 = pnand %p1404_p3, %p1401_p2 }
  0x2c   :  { %1409 = shalt.err (!%p1406_p4)
}
  0x2d   :  { %s1410_s0 = scalar_lea.vmem %s48_s29, 8192  ;;  %p1415_p6 = scmp.lt.s32.totalorder %s48_s29, %s48_s29 }
  0x2e   :  { %p1411_p5 = scmp.ne.s32.totalorder %s48_s29, %s1410_s0  ;;  %p1416_p7 = scmp.lt.s32.totalorder %s1410_s0, %s1410_s0 }
  0x30   :  { %p1417_p8 = por %p1416_p7, %p1415_p6 }
  0x32   :  { %p1418_p9 = pnand %p1417_p8, %p1411_p5 }
  0x34   :  { %1421 = shalt.err (!%p1418_p9)
}
  0x35   :  { %53 = dma.hbm_to_vmem [thread:$0]  %s1638_s3, 8192, %s48_s29, [#allocation6], %s1478_s1, %s1478_s1, %s1479_s25  }
  0x36   :  { %s1422_s20 = scalar_lea.hbm %s1640_s5, 2048 }
  0x37   :  { %p1423_p10 = scmp.ne.s32.totalorder %s1640_s5, %s1422_s20  ;;  %p1426_p11 = scmp.lt.u32.totalorder %s1422_s20, %s1640_s5 }
  0x39   :  { %p1428_p12 = pnand %p1426_p11, %p1423_p10 }
  0x3b   :  { %1431 = shalt.err (!%p1428_p12)
}
  0x3c   :  { %s1432_s26 = scalar_lea.vmem %s1551_s8, 2048  ;;  %p1437_p0 = scmp.lt.s32.totalorder %s1551_s8, %s1551_s8 }
  0x3d   :  { %p1433_p13 = scmp.ne.s32.totalorder %s1551_s8, %s1432_s26  ;;  %p1438_p1 = scmp.lt.s32.totalorder %s1432_s26, %s1432_s26 }
  0x3f   :  { %p1439_p2 = por %p1438_p1, %p1437_p0 }
  0x41   :  { %p1440_p3 = pnand %p1439_p2, %p1433_p13 }
  0x43   :  { %1443 = shalt.err (!%p1440_p3)
}
  0x44   :  { %s1482_s3 = smov 64   ;;  %s1483_s1 = smov 4  }
  0x45   :  { %67 = dma.hbm_to_vmem [thread:$0]  %s1640_s5, 2048, %s1551_s8, [#allocation9], %s1482_s3, %s1482_s3, %s1483_s1  }
  0x46   :  { %1466 = dma.done.wait [#allocation3], 256  }
  0x47   :  { %1467 = vsyncadd [#allocation3], 4294967040 }
  0x48   :  { %1468 = dma.done.wait [#allocation6], 11008  }
  0x49   :  { %1469 = vsyncadd [#allocation6], 4294956288 }
  0x4a   :  { %1470 = dma.done.wait [#allocation9], 2048  }
  0x4b   :  { %1471 = vsyncadd [#allocation9], 4294965248  ;;  %v1484_v0 = vmov 0   ;;  %v1210_v1 = vld [vmem:[#allocation5 + $0x4] ss:$16 sps:$4 sm:$0xff]   ;;  %vm244_vm0 = vcmask 1040384  }
  0x4c   :  { %292 = vmatprep.mubr.bf16.mxu0 %v1484_v0  ;;  %v1212_v2 = vld [vmem:[#allocation5] ss:$16 sps:$4 sm:$0xff]   ;;  %260 = vmatprep.subr.bf16.mxu0 %v1210_v1  ;;  %v1213_v3 = vld [vmem:[#allocation5 + $0x24] ss:$16 sps:$4 sm:$0xff]   ;;  %vm245_vm1 = vcmask 1041408   ;;  %v1485_v9 = vmov 65535  }
  0x4d   :  { %261 = vmatpush1.bf16.msra.mxu0 %v1212_v2  ;;  %v1215_v4 = vld [vmem:[#allocation5 + $0x20] ss:$16 sps:$4 sm:$0xff]   ;;  %v1216_v5 = vld [vmem:[#allocation5 + $0x44] ss:$16 sps:$4 sm:$0xff]   ;;  %v246_v10 = vsel %vm244_vm0, 4294967295, %v1485_v9  ;;  %v84_v24 = vld [vmem:[#allocation2 + $0x8] sm:$0xff] }
  0x4e   :  { %262 = vmatprep.subr.bf16.mxu0 %v1213_v3  ;;  %v1218_v6 = vld [vmem:[#allocation5 + $0x40] ss:$16 sps:$4 sm:$0xff]   ;;  %v1219_v7 = vld [vmem:[#allocation5 + $0x64] ss:$16 sps:$4 sm:$0xff]   ;;  %v1585_v14 = vsel %vm245_vm1, %v246_v10, 0  ;;  %vm240_vm2 = vcmask 678912  }
  0x4f   :  { %v106_v8 = vld [vmem:[#allocation5 + $0xa0] sm:$0x33]  ;;  %v1244_v17 = vld [vmem:[#allocation7 + $0x4] ss:$8 sps:$4 sm:$0xff]   ;;  %v1246_v18 = vld [vmem:[#allocation7] ss:$8 sps:$4 sm:$0xff]  }
  0x50   :  { %v1221_v11 = vld [vmem:[#allocation5 + $0x60] ss:$16 sps:$4 sm:$0xff]   ;;  %v1222_v12 = vld [vmem:[#allocation5 + $0x84] ss:$16 sps:$4 sm:$0xff]   ;;  %v1072_v13 = vcombine.high %v106_v8, %v106_v8  ;;  %v1071_v16 = vcombine.low %v106_v8, %v106_v8  ;;  %754 = vmatprep.subr.bf16.mxu1 %v1244_v17  ;;  %v1229_v26 = vld [vmem:[#allocation5 + $0xc] ss:$16 sps:$4 sm:$0xff]  }
  0x51   :  { %263 = vmatpush1.bf16.msra.mxu0 %v1215_v4  ;;  %v1224_v15 = vld [vmem:[#allocation5 + $0x80] ss:$16 sps:$4 sm:$0xff]   ;;  %v1247_v20 = vld [vmem:[#allocation7 + $0x14] ss:$8 sps:$4 sm:$0xff]   ;;  %755 = vmatpush1.bf16.msra.mxu1 %v1246_v18  ;;  %v1250_v25 = vld [vmem:[#allocation7 + $0x24] ss:$8 sps:$4 sm:$0xff]  }
  0x52   :  { %264 = vmatprep.subr.bf16.mxu0 %v1216_v5  ;;  %v252_v19 = vand.u32 %v1072_v13, %v1585_v14  ;;  %v83_v21 = vld [vmem:[#allocation2] sm:$0xff]  ;;  %v1249_v22 = vld [vmem:[#allocation7 + $0x10] ss:$8 sps:$4 sm:$0xff]   ;;  %v249_v23 = vand.u32 %v1071_v16, %v1585_v14  ;;  %756 = vmatprep.subr.bf16.mxu1 %v1247_v20  ;;  %v1232_v30 = vld [vmem:[#allocation5 + $0x2c] ss:$16 sps:$4 sm:$0xff]   ;;  %s1486_s8 = smov [#allocation10]  }
  0x53   :  { %v1589_v27 = vpack.c.bf16 %v84_v24, %v83_v21  ;;  %v1252_v28 = vld [vmem:[#allocation7 + $0x20] ss:$8 sps:$4 sm:$0xff]   ;;  %v1253_v31 = vld [vmem:[#allocation7 + $0x34] ss:$8 sps:$4 sm:$0xff]   ;;  %v1255_v32 = vld [vmem:[#allocation7 + $0x30] ss:$8 sps:$4 sm:$0xff]  }
  0x54   :  { %v1227_v29 = vld [vmem:[#allocation5 + $0x8] ss:$16 sps:$4 sm:$0xff]   ;;  %v1256_v34 = vld [vmem:[#allocation7 + $0x44] ss:$8 sps:$4 sm:$0xff]   ;;  %v1259_v38 = vld [vmem:[#allocation7 + $0x54] ss:$8 sps:$4 sm:$0xff]  }
  0x55   :  { %265 = vmatpush1.bf16.msra.mxu0 %v1218_v6  ;;  %757 = vmatpush1.bf16.msra.mxu1 %v1249_v22  ;;  %v1230_v33 = vld [vmem:[#allocation5 + $0x28] ss:$16 sps:$4 sm:$0xff]   ;;  %v1235_v35 = vld [vmem:[#allocation5 + $0x4c] ss:$16 sps:$4 sm:$0xff]   ;;  %s1037_s9 = sshll.u32 %s1486_s8, 4  ;;  %s1038_s9 = int_to_ptr.vmem [resolvable:$true] %s1037_s9 }
  0x56   :  { %266 = vmatprep.subr.bf16.mxu0 %v1219_v7  ;;  %758 = vmatprep.subr.bf16.mxu1 %v1250_v25  ;;  %v1233_v36 = vld [vmem:[#allocation5 + $0x48] ss:$16 sps:$4 sm:$0xff]   ;;  %v1238_v39 = vld [vmem:[#allocation5 + $0x6c] ss:$16 sps:$4 sm:$0xff]   ;;  %s1444_s10 = scalar_lea.vmem %s1038_s9, 128  ;;  %p1449_p5 = scmp.lt.s32.totalorder %s1038_s9, %s1038_s9 }
  0x57   :  { %v1258_v37 = vld [vmem:[#allocation7 + $0x40] ss:$8 sps:$4 sm:$0xff]   ;;  %v107_v40 = vld [vmem:[#allocation5 + $0xa8] sm:$0x33]  ;;  %v1262_v43 = vld [vmem:[#allocation7 + $0x64] ss:$8 sps:$4 sm:$0xff]   ;;  %p1445_p4 = scmp.ne.s32.totalorder %s1038_s9, %s1444_s10  ;;  %p1450_p6 = scmp.lt.s32.totalorder %s1444_s10, %s1444_s10 }
  0x58   :  { %v1261_v41 = vld [vmem:[#allocation7 + $0x50] ss:$8 sps:$4 sm:$0xff]   ;;  %v1241_v44 = vld [vmem:[#allocation5 + $0x8c] ss:$16 sps:$4 sm:$0xff]   ;;  %v1074_v45 = vcombine.high %v107_v40, %v107_v40  ;;  %v1267_v47 = vld [vmem:[#allocation7 + $0x60] ss:$8 sps:$4 sm:$0xff]   ;;  %v1073_v48 = vcombine.low %v107_v40, %v107_v40 }
  0x59   :  { %267 = vmatpush1.bf16.msra.mxu0 %v1221_v11  ;;  %759 = vmatpush1.bf16.msra.mxu1 %v1252_v28  ;;  %v1236_v42 = vld [vmem:[#allocation5 + $0x68] ss:$16 sps:$4 sm:$0xff]   ;;  %v1268_v49 = vld [vmem:[#allocation7 + $0x74] ss:$8 sps:$4 sm:$0xff]   ;;  %v1266_v53 = vld [vmem:[#allocation7 + $0x104] ss:$8 sps:$4 sm:$0xff]   ;;  %p1451_p7 = por %p1450_p6, %p1449_p5 }
  0x5a   :  { %268 = vmatprep.subr.bf16.mxu0 %v1222_v12  ;;  %760 = vmatprep.subr.bf16.mxu1 %v1253_v31  ;;  %v1239_v46 = vld [vmem:[#allocation5 + $0x88] ss:$16 sps:$4 sm:$0xff]   ;;  %v258_v50 = vand.u32 %v1074_v45, %v1585_v14  ;;  %v255_v52 = vand.u32 %v1073_v48, %v1585_v14  ;;  %v1274_v54 = vld [vmem:[#allocation7 + $0x84] ss:$8 sps:$4 sm:$0xff]   ;;  %v1280_v57 = vld [vmem:[#allocation7 + $0x94] ss:$8 sps:$4 sm:$0xff]  }
  0x5b   :  { %v1273_v51 = vld [vmem:[#allocation7 + $0x70] ss:$8 sps:$4 sm:$0xff]   ;;  %v1279_v55 = vld [vmem:[#allocation7 + $0x80] ss:$8 sps:$4 sm:$0xff]   ;;  %v1272_v58 = vld [vmem:[#allocation7 + $0x114] ss:$8 sps:$4 sm:$0xff]   ;;  %p1452_p8 = pnand %p1451_p7, %p1445_p4 }
  0x5c   :  { %v1264_v56 = vld [vmem:[#allocation7 + $0x100] ss:$8 sps:$4 sm:$0xff]   ;;  %v1285_v59 = vld [vmem:[#allocation7 + $0x90] ss:$8 sps:$4 sm:$0xff]   ;;  %v1286_v61 = vld [vmem:[#allocation7 + $0xa4] ss:$8 sps:$4 sm:$0xff]  }
  0x5d   :  { %269 = vmatpush1.bf16.msra.mxu0 %v1224_v15  ;;  %761 = vmatpush1.bf16.msra.mxu1 %v1255_v32  ;;  %v1270_v60 = vld [vmem:[#allocation7 + $0x110] ss:$8 sps:$4 sm:$0xff]   ;;  %v1278_v62 = vld [vmem:[#allocation7 + $0x124] ss:$8 sps:$4 sm:$0xff]   ;;  %v1291_v63 = vld [vmem:[#allocation7 + $0xa0] ss:$8 sps:$4 sm:$0xff]  }
  0x5e   :  { %270 = vmatprep.subr.bf16.mxu0 %v252_v19  ;;  %762 = vmatprep.subr.bf16.mxu1 %v1256_v34  ;;  %v1292_v1 = vld [vmem:[#allocation7 + $0xb4] ss:$8 sps:$4 sm:$0xff]   ;;  %v1297_v3 = vld [vmem:[#allocation7 + $0xb0] ss:$8 sps:$4 sm:$0xff]   ;;  %v1298_v5 = vld [vmem:[#allocation7 + $0xc4] ss:$8 sps:$4 sm:$0xff]  }
  0x5f   :  { %v1284_v2 = vld [vmem:[#allocation7 + $0x134] ss:$8 sps:$4 sm:$0xff]   ;;  %v1282_v4 = vld [vmem:[#allocation7 + $0x130] ss:$8 sps:$4 sm:$0xff]   ;;  %v1290_v6 = vld [vmem:[#allocation7 + $0x144] ss:$8 sps:$4 sm:$0xff]  }
  0x60   :  { %v1303_v7 = vld [vmem:[#allocation7 + $0xc0] ss:$8 sps:$4 sm:$0xff]   ;;  %v1304_v9 = vld [vmem:[#allocation7 + $0xd4] ss:$8 sps:$4 sm:$0xff]   ;;  %v1294_v11 = vld [vmem:[#allocation7 + $0x150] ss:$8 sps:$4 sm:$0xff]  }
  0x61   :  { %271 = vmatpush1.bf16.msra.mxu0 %v249_v23  ;;  %763 = vmatpush1.bf16.msra.mxu1 %v1258_v37  ;;  %v1288_v8 = vld [vmem:[#allocation7 + $0x140] ss:$8 sps:$4 sm:$0xff]   ;;  %v1296_v10 = vld [vmem:[#allocation7 + $0x154] ss:$8 sps:$4 sm:$0xff]   ;;  %v1302_v12 = vld [vmem:[#allocation7 + $0x164] ss:$8 sps:$4 sm:$0xff]   ;;  %v110_v37 = vlaneseq }
  0x62   :  { %303 = vmatprep.subr.bf16.mxu0 %v1229_v26  ;;  %764 = vmatprep.subr.bf16.mxu1 %v1259_v38  ;;  %v1300_v13 = vld [vmem:[#allocation7 + $0x160] ss:$8 sps:$4 sm:$0xff]   ;;  %v1308_v14 = vld [vmem:[#allocation7 + $0x174] ss:$8 sps:$4 sm:$0xff]   ;;  %v1306_v15 = vld [vmem:[#allocation7 + $0x170] ss:$8 sps:$4 sm:$0xff]  }
  0x63   :  { %v1309_v16 = vld [vmem:[#allocation7 + $0xd0] ss:$8 sps:$4 sm:$0xff]   ;;  %v1310_v17 = vld [vmem:[#allocation7 + $0xe4] ss:$8 sps:$4 sm:$0xff]   ;;  %v1312_v19 = vld [vmem:[#allocation7 + $0x180] ss:$8 sps:$4 sm:$0xff]  }
  0x64   :  { %1075 = vmatmul.mubr.msk.bf16.vlgmr.msra.gmra.mrb[0].mxu0 %vm240_vm2, %v1589_v27  ;;  %v1314_v18 = vld [vmem:[#allocation7 + $0x184] ss:$8 sps:$4 sm:$0xff]   ;;  %v1315_v20 = vld [vmem:[#allocation7 + $0xe0] ss:$8 sps:$4 sm:$0xff]   ;;  %v1316_v21 = vld [vmem:[#allocation7 + $0xf4] ss:$8 sps:$4 sm:$0xff]  }
  0x65   :  { %304 = vmatpush1.bf16.msra.mxu0 %v1227_v29  ;;  %335 = vmatprep.mubr.bf16.mxu0 %v1484_v0  ;;  %v1276_v0 = vld [vmem:[#allocation7 + $0x120] ss:$8 sps:$4 sm:$0xff]   ;;  %v1320_v22 = vld [vmem:[#allocation7 + $0x194] ss:$8 sps:$4 sm:$0xff]   ;;  %v1318_v23 = vld [vmem:[#allocation7 + $0x190] ss:$8 sps:$4 sm:$0xff]  }
  0x66   :  { %305 = vmatprep.subr.bf16.mxu0 %v1232_v30  ;;  %765 = vmatpush1.bf16.msra.mxu1 %v1261_v41  ;;  %v1321_v24 = vld [vmem:[#allocation7 + $0xf0] ss:$8 sps:$4 sm:$0xff]   ;;  %v1324_v25 = vld [vmem:[#allocation7 + $0x1a4] ss:$8 sps:$4 sm:$0xff]   ;;  %v1322_v26 = vld [vmem:[#allocation7 + $0x1a0] ss:$8 sps:$4 sm:$0xff]  }
  0x67   :  { %766 = vmatprep.subr.bf16.mxu1 %v1262_v43  ;;  %v1325_v28 = vld [vmem:[#allocation7 + $0x1b0] ss:$8 sps:$4 sm:$0xff]   ;;  %v1330_v29 = vld [vmem:[#allocation7 + $0x1c4] ss:$8 sps:$4 sm:$0xff]   ;;  %v1328_v30 = vld [vmem:[#allocation7 + $0x1c0] ss:$8 sps:$4 sm:$0xff]  }
  0x68   :  { %v1333_v31 = vld [vmem:[#allocation7 + $0x1d4] ss:$8 sps:$4 sm:$0xff]   ;;  %v1331_v32 = vld [vmem:[#allocation7 + $0x1d0] ss:$8 sps:$4 sm:$0xff]   ;;  %v1334_v34 = vld [vmem:[#allocation7 + $0x1e0] ss:$8 sps:$4 sm:$0xff]  }
  0x69   :  { %306 = vmatpush1.bf16.msra.mxu0 %v1230_v33  ;;  %v1336_v33 = vld [vmem:[#allocation7 + $0x1e4] ss:$8 sps:$4 sm:$0xff]   ;;  %v1597_v38 = vshrl.u32 %v110_v37, 7  ;;  %v108_v40 = vld [vmem:[%s1637_s2] sm:$0xf] }
  0x6a   :  { %307 = vmatprep.subr.bf16.mxu0 %v1235_v35  ;;  %767 = vmatpush1.bf16.msra.mxu1 %v1267_v47  ;;  %v1339_v35 = vld [vmem:[#allocation7 + $0x1f4] ss:$8 sps:$4 sm:$0xff]  }
  0x6b   :  { %768 = vmatprep.subr.bf16.mxu1 %v1268_v49  ;;  %v116_v41 = vsub.s32 1, %v1597_v38 }
  0x6d   :  { %308 = vmatpush1.bf16.msra.mxu0 %v1233_v36  ;;  %v1337_v36 = vld [vmem:[#allocation7 + $0x1f0] ss:$8 sps:$4 sm:$0xff]   ;;  %v117_v43 = vrot.slane %v108_v40, %v116_v41 }
  0x6e   :  { %309 = vmatprep.subr.bf16.mxu0 %v1238_v39  ;;  %769 = vmatpush1.bf16.msra.mxu1 %v1273_v51  ;;  %v112_v39 = vsub.s32 0, %v1597_v38 }
  0x6f   :  { %770 = vmatprep.subr.bf16.mxu1 %v1274_v54 }
  0x71   :  { %310 = vmatpush1.bf16.msra.mxu0 %v1236_v42  ;;  %v113_v42 = vrot.slane %v108_v40, %v112_v39 }
  0x72   :  { %311 = vmatprep.subr.bf16.mxu0 %v1241_v44  ;;  %771 = vmatpush1.bf16.msra.mxu1 %v1279_v55 }
  0x73   :  { %772 = vmatprep.subr.bf16.mxu1 %v1280_v57 }
  0x75   :  { %312 = vmatpush1.bf16.msra.mxu0 %v1239_v46 }
  0x76   :  { %313 = vmatprep.subr.bf16.mxu0 %v258_v50  ;;  %773 = vmatpush1.bf16.msra.mxu1 %v1285_v59  ;;  %v124_v59 = vsub.s32 3, %v1597_v38 }
  0x77   :  { %774 = vmatprep.subr.bf16.mxu1 %v1286_v61 }
  0x78   :  { %v125_v61 = vrot.slane %v108_v40, %v124_v59 }
  0x79   :  { %314 = vmatpush1.bf16.msra.mxu0 %v255_v52 }
  0x7a   :  { %797 = vmatprep.subr.bf16.mxu0 %v1266_v53  ;;  %775 = vmatpush1.bf16.msra.mxu1 %v1291_v63 }
  0x7b   :  { %776 = vmatprep.subr.bf16.mxu1 %v1292_v1 }
  0x7c   :  { %1076 = vmatmul.mubr.msk.bf16.vlgmr.msra.gmra.mrb[4].mxu0 %vm240_vm2, %v1589_v27  ;;  %v1327_v27 = vld [vmem:[#allocation7 + $0x1b4] ss:$8 sps:$4 sm:$0xff]  }
  0x7d   :  { %798 = vmatpush1.bf16.msra.mxu0 %v1264_v56 }
  0x7e   :  { %799 = vmatprep.subr.bf16.mxu0 %v1272_v58  ;;  %777 = vmatpush1.bf16.msra.mxu1 %v1297_v3  ;;  %v120_v58 = vsub.s32 2, %v1597_v38 }
  0x7f   :  { %778 = vmatprep.subr.bf16.mxu1 %v1298_v5 }
  0x81   :  { %800 = vmatpush1.bf16.msra.mxu0 %v1270_v60  ;;  %v121_v60 = vrot.slane %v108_v40, %v120_v58 }
  0x82   :  { %801 = vmatprep.subr.bf16.mxu0 %v1278_v62  ;;  %779 = vmatpush1.bf16.msra.mxu1 %v1303_v7 }
  0x83   :  { %780 = vmatprep.subr.bf16.mxu1 %v1304_v9 }
  0x85   :  { %802 = vmatpush1.bf16.msra.mxu0 %v1276_v0 }
  0x86   :  { %803 = vmatprep.subr.bf16.mxu0 %v1284_v2  ;;  %781 = vmatpush1.bf16.msra.mxu1 %v1309_v16  ;;  %v1344_v16 = vld [vmem:[#allocation8 + $0x50] sm:$0xff]  }
  0x87   :  { %782 = vmatprep.subr.bf16.mxu1 %v1310_v17  ;;  %v1345_v17 = vld [vmem:[#allocation8 + $0x10] sm:$0xff]  }
  0x89   :  { %804 = vmatpush1.bf16.msra.mxu0 %v1282_v4 }
  0x8a   :  { %805 = vmatprep.subr.bf16.mxu0 %v1290_v6  ;;  %783 = vmatpush1.bf16.msra.mxu1 %v1315_v20  ;;  %v1348_v20 = vld [vmem:[#allocation8 + $0x60] sm:$0xff]  }
  0x8b   :  { %784 = vmatprep.subr.bf16.mxu1 %v1316_v21  ;;  %v1349_v21 = vld [vmem:[#allocation8 + $0x20] sm:$0xff]  }
  0x8d   :  { %806 = vmatpush1.bf16.msra.mxu0 %v1288_v8 }
  0x8e   :  { %807 = vmatprep.subr.bf16.mxu0 %v1296_v10  ;;  %785 = vmatpush1.bf16.msra.mxu1 %v1321_v24  ;;  %v1352_v24 = vld [vmem:[#allocation8 + $0x70] sm:$0xff]  }
  0x91   :  { %808 = vmatpush1.bf16.msra.mxu0 %v1294_v11 }
  0x92   :  { %809 = vmatprep.subr.bf16.mxu0 %v1302_v12  ;;  %v1340_v12 = vld [vmem:[#allocation8 + $0x40] sm:$0xff]  }
  0x93   :  { %1167 = vmatprep.subr.bf16.mxu1 %v1340_v12 }
  0x95   :  { %810 = vmatpush1.bf16.msra.mxu0 %v1300_v13  ;;  %v1341_v13 = vld [vmem:[#allocation8] sm:$0xff]  }
  0x96   :  { %811 = vmatprep.subr.bf16.mxu0 %v1308_v14  ;;  %v1342_v14 = vld [vmem:[#allocation8 + $0x48] sm:$0xff]  }
  0x99   :  { %812 = vmatpush1.bf16.msra.mxu0 %v1306_v15  ;;  %v1343_v15 = vld [vmem:[#allocation8 + $0x8] sm:$0xff]  }
  0x9a   :  { %813 = vmatprep.subr.bf16.mxu0 %v1314_v18  ;;  %v1346_v18 = vld [vmem:[#allocation8 + $0x58] sm:$0xff]  }
  0x9d   :  { %814 = vmatpush1.bf16.msra.mxu0 %v1312_v19  ;;  %v1347_v19 = vld [vmem:[#allocation8 + $0x18] sm:$0xff]  }
  0x9e   :  { %815 = vmatprep.subr.bf16.mxu0 %v1320_v22  ;;  %v1350_v22 = vld [vmem:[#allocation8 + $0x68] sm:$0xff]  }
  0xa1   :  { %816 = vmatpush1.bf16.msra.mxu0 %v1318_v23  ;;  %v1351_v23 = vld [vmem:[#allocation8 + $0x28] sm:$0xff]  }
  0xa2   :  { %817 = vmatprep.subr.bf16.mxu0 %v1324_v25  ;;  %v1353_v25 = vld [vmem:[#allocation8 + $0x30] sm:$0xff]  }
  0xa5   :  { %818 = vmatpush1.bf16.msra.mxu0 %v1322_v26  ;;  %v1354_v26 = vld [vmem:[#allocation8 + $0x78] sm:$0xff]  }
  0xa6   :  { %819 = vmatprep.subr.bf16.mxu0 %v1327_v27  ;;  %v1355_v27 = vld [vmem:[#allocation8 + $0x38] sm:$0xff]  }
  0xa9   :  { %820 = vmatpush1.bf16.msra.mxu0 %v1325_v28 }
  0xaa   :  { %821 = vmatprep.subr.bf16.mxu0 %v1330_v29 }
  0xad   :  { %822 = vmatpush1.bf16.msra.mxu0 %v1328_v30 }
  0xae   :  { %823 = vmatprep.subr.bf16.mxu0 %v1333_v31 }
  0xb1   :  { %824 = vmatpush1.bf16.msra.mxu0 %v1331_v32  ;;  %v422_v32 = vld [vmem:[%s1639_s4] sm:$0x3] }
  0xb2   :  { %825 = vmatprep.subr.bf16.mxu0 %v1336_v33  ;;  %v427_v33 = vrot.slane %v422_v32, %v112_v39 }
  0xb5   :  { %826 = vmatpush1.bf16.msra.mxu0 %v1334_v34  ;;  %v431_v34 = vrot.slane %v422_v32, %v116_v41 }
  0xb6   :  { %827 = vmatprep.subr.bf16.mxu0 %v1339_v35 }
  0xb9   :  { %828 = vmatpush1.bf16.msra.mxu0 %v1337_v36 }
 0x137   :  { %v294_v44 = vpop.f32.mrb[0].mxu0 }
 0x138   :  { %v295_v45 = vadd.f32 %v294_v44, %v113_v42  ;;  %v296_v46 = vpop.f32.mrb[1].mxu0 }
 0x139   :  { %v297_v47 = vadd.f32 %v296_v46, %v117_v43  ;;  %v298_v48 = vpop.f32.mrb[2].mxu0 }
 0x13a   :  { %v346_v49 = vmax.f32 %v295_v45, 0.0  ;;  %v299_v50 = vadd.f32 %v298_v48, %v113_v42  ;;  %v300_v51 = vpop.f32.mrb[3].mxu0 }
 0x13b   :  { %v301_v52 = vadd.f32 %v300_v51, %v117_v43  ;;  %v347_v54 = vmax.f32 %v297_v47, 0.0 }
 0x13c   :  { %v350_v53 = vmax.f32 %v299_v50, 0.0 }
 0x13d   :  { %v351_v55 = vmax.f32 %v301_v52, 0.0 }
 0x13e   :  { %v354_v56 = vpack.c.bf16 %v350_v53, %v346_v49 }
 0x13f   :  { %v355_v57 = vpack.c.bf16 %v351_v55, %v347_v54 }
 0x141   :  { %786 = vmatprep.mubr.bf16.mxu1 %v355_v57  ;;  %v1141_v57 = vld [vmem:[%s1641_s6] ss:$0 sm:$0xff] }
 0x142   :  { %787 = vmatmul.mubr.bf16.vlgmr.msra.gmra.mrb[0].mxu1 %v354_v56 }
 0x143   :  { %1168 = vmatpush3.bf16.msra.mxu1 %v1341_v13 }
 0x144   :  { %1169 = vmatprep.subr.bf16.mxu1 %v1342_v14 }
 0x147   :  { %1170 = vmatpush3.bf16.msra.mxu1 %v1343_v15 }
 0x148   :  { %1171 = vmatprep.subr.bf16.mxu1 %v1344_v16 }
 0x14b   :  { %1172 = vmatpush3.bf16.msra.mxu1 %v1345_v17 }
 0x14c   :  { %1173 = vmatprep.subr.bf16.mxu1 %v1346_v18 }
 0x14f   :  { %v337_v62 = vpop.f32.mrb[4].mxu0  ;;  %1174 = vmatpush3.bf16.msra.mxu1 %v1347_v19 }
 0x150   :  { %v338_v63 = vadd.f32 %v337_v62, %v121_v60  ;;  %v339_v0 = vpop.f32.mrb[5].mxu0  ;;  %1175 = vmatprep.subr.bf16.mxu1 %v1348_v20 }
 0x151   :  { %v340_v1 = vadd.f32 %v339_v0, %v125_v61  ;;  %v341_v2 = vpop.f32.mrb[6].mxu0 }
 0x152   :  { %v342_v3 = vadd.f32 %v341_v2, %v121_v60  ;;  %v343_v4 = vpop.f32.mrb[7].mxu0  ;;  %v348_v6 = vmax.f32 %v338_v63, 0.0 }
 0x153   :  { %v344_v5 = vadd.f32 %v343_v4, %v125_v61  ;;  %v349_v8 = vmax.f32 %v340_v1, 0.0  ;;  %1176 = vmatpush3.bf16.msra.mxu1 %v1349_v21 }
 0x154   :  { %v352_v7 = vmax.f32 %v342_v3, 0.0  ;;  %1177 = vmatprep.subr.bf16.mxu1 %v1350_v22 }
 0x155   :  { %v353_v9 = vmax.f32 %v344_v5, 0.0 }
 0x156   :  { %v356_v10 = vpack.c.bf16 %v352_v7, %v348_v6 }
 0x157   :  { %v357_v11 = vpack.c.bf16 %v353_v9, %v349_v8  ;;  %1178 = vmatpush3.bf16.msra.mxu1 %v1351_v23 }
 0x158   :  { %1179 = vmatprep.subr.bf16.mxu1 %v1352_v24 }
 0x159   :  { %829 = vmatprep.mubr.bf16.mxu0 %v357_v11 }
 0x15a   :  { %830 = vmatmul.mubr.bf16.vlgmr.msra.gmra.mrb[8].mxu0 %v356_v10 }
 0x15b   :  { %1180 = vmatpush3.bf16.msra.mxu1 %v1353_v25 }
 0x15c   :  { %1181 = vmatprep.subr.bf16.mxu1 %v1354_v26 }
 0x15f   :  { %1182 = vmatpush3.bf16.msra.mxu1 %v1355_v27 }
 0x215   :  { %v788_v28 = vpop.f32.mrb[0].mxu1 }
 0x216   :  { %v790_v29 = vpop.f32.mrb[1].mxu1  ;;  %v789_v35 = vadd.f32 %v788_v28, %v427_v33 }
 0x217   :  { %v792_v30 = vpop.f32.mrb[2].mxu1  ;;  %v791_v36 = vadd.f32 %v790_v29, %v431_v34 }
 0x218   :  { %v794_v31 = vpop.f32.mrb[3].mxu1  ;;  %v793_v40 = vadd.f32 %v792_v30, %v427_v33 }
 0x219   :  { %v795_v44 = vadd.f32 %v794_v31, %v431_v34 }
 0x22d   :  { %v831_v37 = vpop.f32.mrb[8].mxu0 }
 0x22e   :  { %v832_v42 = vadd.f32 %v831_v37, %v789_v35  ;;  %v833_v43 = vpop.f32.mrb[9].mxu0 }
 0x22f   :  { %v834_v45 = vadd.f32 %v833_v43, %v791_v36  ;;  %v835_v46 = vpop.f32.mrb[10].mxu0 }
 0x230   :  { %v836_v47 = vadd.f32 %v835_v46, %v793_v40  ;;  %v837_v48 = vpop.f32.mrb[11].mxu0  ;;  %v840_v50 = vmax.f32 %v832_v42, 0.0 }
 0x231   :  { %v838_v49 = vadd.f32 %v837_v48, %v795_v44  ;;  %v841_v52 = vmax.f32 %v834_v45, 0.0 }
 0x232   :  { %v842_v51 = vmax.f32 %v836_v47, 0.0 }
 0x233   :  { %v843_v53 = vmax.f32 %v838_v49, 0.0 }
 0x234   :  { %v844_v39 = vpack.c.bf16 %v842_v51, %v840_v50 }
 0x235   :  { %v845_v54 = vpack.c.bf16 %v843_v53, %v841_v52 }
 0x237   :  { %1013 = vmatprep.mubr.bf16.mxu1 %v845_v54 }
 0x238   :  { %1014 = vmatmul.mubr.bf16.vlgmr.msra.gmra.mrb[4].mxu1 %v844_v39 }
 0x30b   :  { %v1183_v38 = vpop.f32.mrb[4].mxu1 }
 0x30c   :  { %v1184_v41 = vpop.f32.mrb[5].mxu1 }
 0x30d   :  { %v1185_v55 = vadd.f32 %v1184_v41, %v1183_v38  ;;  %v1186_v56 = vpop.f32.mrb[6].mxu1 }
 0x30e   :  { %v1187_v58 = vpop.f32.mrb[7].mxu1 }
 0x30f   :  { %v1188_v59 = vadd.f32 %v1187_v58, %v1186_v56  ;;  %v1016_v60 = vadd.f32 %v1185_v55, %v1141_v57 }
 0x311   :  { %v1019_v61 = vadd.f32 %v1188_v59, %v1141_v57 }
 0x313   :  { %v1165_v62 = vpack.c.bf16 %v1019_v61, %v1016_v60 }
 0x315   :  { %1166 = vst [vmem:[#allocation10] sm:$0xff] %v1165_v62  }
 0x316   :  { %1455 = shalt.err (!%p1452_p8)
}
 0x317   :  { %s1456_s6 = scalar_lea.hbm %s1642_s7, 128 }
 0x318   :  { %p1457_p9 = scmp.ne.s32.totalorder %s1642_s7, %s1456_s6  ;;  %p1460_p10 = scmp.lt.u32.totalorder %s1456_s6, %s1642_s7 }
 0x31a   :  { %p1462_p11 = pnand %p1460_p10, %p1457_p9 }
 0x31c   :  { %1465 = shalt.err (!%p1462_p11)
}
 0x31d   :  { %1043 = dma.vmem_to_hbm [thread:$0]  %s1038_s9, 128, %s1642_s7, [#allocation4], %s1482_s3, %s1482_s3, %s1483_s1  }
 0x31e   :  { %1472 = dma.done.wait [#allocation4], 128  }
 0x31f   :  { %1473 = vsyncadd [#allocation4], 4294967168 }
 0x320   :  { %1047 = vsyncpa [#allocation3], 1 }
 0x321   :  { %1048 = vsyncpa [#allocation6], 1 }
 0x322   :  { %1049 = vsyncpa [#allocation9], 1 }
 0x323   :  { %1050 = vsyncpa [#allocation4], 1 }

</bundles_post_ra>
